<compile_context>
chip_gen: v6e
topology: v6e:2x2x1
jax: 0.10.0
libtpu: 0.0.40
codegen_flags: <defaults>
</compile_context>

<pallas_src>
import math

import jax
import jax.numpy as jnp
from jax.experimental import pallas as pl
from jax.experimental.pallas import tpu as pltpu


def _round_up(x, m):
    return ((x + m - 1) // m) * m


def _invariant_spec(shape, index_map):
    """BlockSpec for a grid-invariant operand: one VMEM buffer is enough."""
    try:
        return pl.BlockSpec(shape, index_map, pipeline_mode=pl.Buffered(1))
    except (AttributeError, TypeError):
        return pl.BlockSpec(shape, index_map)


def adjacency_embedding_kernel(a_ref, c_ref, bias_ref, o_ref, acc_ref):
    # a_ref:    (Bt, Kt)   flattened adjacency block (K = N*N contraction dim)
    # c_ref:    (Kt, Mp)   folded-weight tile   C = w_a (outer) W_h
    # bias_ref: (1,  Mp)   bias row (f32)
    # o_ref:    (Bt, Mp)   output block
    # acc_ref:  (Bt, Mp)   f32 accumulator scratch (persists across K steps)
    k = pl.program_id(1)

    @pl.when(k == 0)
    def _init():
        acc_ref[...] = jnp.zeros_like(acc_ref)

    acc_ref[...] += jnp.dot(a_ref[...], c_ref[...],
                            preferred_element_type=jnp.float32)

    @pl.when(k == pl.num_programs(1) - 1)
    def _finalize():
        o_ref[...] = (acc_ref[...] + bias_ref[...]).astype(o_ref.dtype)


def adjacency_embedding(input_mat, weight_h, weight_a, bias=None, *,
                        block_b=8192, compute_dtype=None):
    B, N, N2 = input_mat.shape
    assert N == N2, "adjacency matrix must be square (input_dim x input_dim)"
    M = weight_h.shape[1]
    out_dtype = input_mat.dtype
    cdtype = jnp.dtype(compute_dtype) if compute_dtype is not None else jnp.dtype(out_dtype)
    c_item = cdtype.itemsize
    o_item = jnp.dtype(out_dtype).itemsize

    # --- Fold weight_a into weight_h once (f32), flatten A: one GEMM remains.
    # TODO(synk): for very large N*M the factored form (contract weight_a
    # first, then @ weight_h) avoids materializing the (N*N, M) operand.
    C = (weight_a.astype(jnp.float32)[:, None, None]
         * weight_h.astype(jnp.float32)[None, :, :]).reshape(N * N, M)
    A_flat = input_mat.reshape(B, N * N)

    if bias is None:
        bias = jnp.zeros((M,), jnp.float32)

    # --- Lane-align output (M) and contraction (K = N*N) dims. ---
    K = N * N
    Mp = _round_up(M, 128)
    Kp = _round_up(K, 128)

    # --- K tiling: keep C fully resident if it fits the C budget, else stream.
    VMEM_BUDGET = 44 << 20          # total buffer budget (safe for v7x 64 MiB)
    C_BUDGET = 22 << 20
    if Kp * Mp * c_item <= C_BUDGET:
        Kt, c_nbuf = Kp, 1          # single K step, C resident (single-buffered)
    else:
        Kt = max(128, ((C_BUDGET // (2 * Mp * c_item)) // 128) * 128)
        Kt = min(Kt, Kp)
        c_nbuf = 2                  # C streamed along K (double-buffered)
    nk = -(-Kp // Kt)
    Kpad = nk * Kt

    if Kpad != K or Mp != M:
        C = jnp.pad(C, ((0, Kpad - K), (0, Mp - M)))
    if Kpad != K:
        A_flat = jnp.pad(A_flat, ((0, 0), (0, Kpad - K)))
    bias2d = jnp.pad(bias.astype(jnp.float32), (0, Mp - M)).reshape(1, Mp)
    C = C.astype(cdtype)
    A_flat = A_flat.astype(cdtype)

    # --- Batch blocking: account for EVERY VMEM resident. ---
    c_bytes = c_nbuf * Kt * Mp * c_item
    bias_bytes = Mp * 4
    per_row = 2 * Kt * c_item + 2 * Mp * o_item + Mp * 4   # A dbuf + out dbuf + acc
    remaining = max(VMEM_BUDGET - c_bytes - bias_bytes, 8 * per_row)
    bt_vmem = max(8, (remaining // per_row) // 8 * 8)

    bt_full = _round_up(B, 8)
    bt_caps = [block_b, bt_vmem, bt_full]
    if B >= 16:
        # Keep >= 2 batch grid steps so the "parallel" axis can split across
        # the two TensorCores of a v7x chip.
        bt_caps.append(_round_up(-(-B // 2), 8))
    Bt = max(8, (min(bt_caps) // 8) * 8)
    # Rebalance: same number of batch steps with the smallest aligned block
    # (avoids a nearly-empty trailing block).
    nb = -(-bt_full // Bt)
    Bt = min(Bt, _round_up(-(-bt_full // nb), 8))

    Bp = _round_up(B, Bt)
    if Bp != B:
        A_flat = jnp.pad(A_flat, ((0, Bp - B), (0, 0)))
    grid = (Bp // Bt, nk)

    # --- Specs ---
    a_spec = pl.BlockSpec((Bt, Kt), lambda b, k: (b, k))      # streamed
    if c_nbuf == 1:
        c_spec = _invariant_spec((Kt, Mp), lambda b, k: (0, 0))   # resident
    else:
        c_spec = pl.BlockSpec((Kt, Mp), lambda b, k: (k, 0))      # streamed over K
    bias_spec = _invariant_spec((1, Mp), lambda b, k: (0, 0))
    out_spec = pl.BlockSpec((Bt, Mp), lambda b, k: (b, 0))

    vmem_usage = (c_bytes + bias_bytes
                  + 2 * Bt * Kt * c_item        # A double buffer
                  + 2 * Bt * Mp * o_item        # out double buffer
                  + Bt * Mp * 4)                # f32 accumulator scratch
    vmem_limit = int(min(56 << 20, max(32 << 20, vmem_usage + (4 << 20))))

    flops = 2 * Bp * Kpad * Mp
    bytes_accessed = (Bp * Kpad * c_item + Kpad * Mp * c_item
                      + Bp * Mp * o_item + Mp * 4)

    out = pl.pallas_call(
        adjacency_embedding_kernel,
        out_shape=jax.ShapeDtypeStruct((Bp, Mp), out_dtype),
        grid_spec=pltpu.PrefetchScalarGridSpec(
            num_scalar_prefetch=0,
            grid=grid,
            in_specs=[a_spec, c_spec, bias_spec],
            out_specs=out_spec,
            scratch_shapes=[pltpu.VMEM((Bt, Mp), jnp.float32)],
        ),
        compiler_params=pltpu.CompilerParams(
            dimension_semantics=("parallel", "arbitrary"),
            vmem_limit_bytes=vmem_limit),
        cost_estimate=pl.CostEstimate(
            flops=flops, transcendentals=0, bytes_accessed=bytes_accessed),
    )(A_flat, C, bias2d)

    return out[:B, :M]


def reference(input_mat, weight_h, weight_a, bias):
    # Pure-JAX reference mirroring the PyTorch forward.
    a_w = jnp.einsum("bij,jm->bim", input_mat, weight_h)               # (B, N, M)
    out = jnp.einsum("bmi,i->bm", a_w.transpose(0, 2, 1), weight_a)    # (B, M)
    return out + bias


if __name__ == "__main__":
    def make_inputs(key, B, N, M):
        k_wh, k_wa, k_b, k_x = jax.random.split(key, 4)
        # Deterministic init mirroring reset_parameters():
        stdv = 1.0 / math.sqrt(M)    # 1 / sqrt(weight_h.size(1))
        stdv2 = 1.0 / math.sqrt(N)   # 1 / sqrt(weight_a.size(0))
        weight_h = jax.random.uniform(k_wh, (N, M), jnp.float32, -stdv, stdv)
        weight_a = jax.random.uniform(k_wa, (N,), jnp.float32, -stdv2, stdv2)
        bias = jax.random.uniform(k_b, (M,), jnp.float32, -stdv, stdv)
        x = jax.random.normal(k_x, (B, N, N), dtype=jnp.float32)
        return x, weight_h, weight_a, bias

    key = jax.random.PRNGKey(0)
    k1, k2 = jax.random.split(key)

    # Primary small config: batch=2, input_dim=16, model_dim=32.
    x, wh, wa, b = make_inputs(k1, 2, 16, 32)
    out = jax.block_until_ready(adjacency_embedding(x, wh, wa, b))
    ref = reference(x, wh, wa, b)
    assert out.shape == (2, 32), out.shape
    assert jnp.allclose(out, ref, atol=1e-5, rtol=1e-5), "mismatch vs reference (f32)"

    # Non-aligned shapes exercise the K / M / batch padding paths.
    x2, wh2, wa2, b2 = make_inputs(k2, 5, 10, 40)
    out2 = jax.block_until_ready(adjacency_embedding(x2, wh2, wa2, b2))
    ref2 = reference(x2, wh2, wa2, b2)
    assert out2.shape == (5, 40), out2.shape
    assert jnp.allclose(out2, ref2, atol=1e-5, rtol=1e-5), "mismatch vs reference (padded)"

    # bf16 compute path (halves A's HBM traffic); f32 accumulate keeps accuracy.
    out3 = jax.block_until_ready(
        adjacency_embedding(x, wh, wa, b, compute_dtype=jnp.bfloat16))
    assert jnp.allclose(out3, ref, atol=3e-2, rtol=3e-2), "mismatch vs reference (bf16)"

    print("KERNEL_OK")
</pallas_src>

<mosaic_0001>
module attributes {stable_mosaic.version = 11 : i64} {
  func.func @adjacency_embedding_kernel(%arg0: i32, %arg1: i32, %arg2: memref<8x256xf32, #tpu.memory_space<vmem>>, %arg3: memref<256x128xf32, #tpu.memory_space<vmem>>, %arg4: memref<1x128xf32, #tpu.memory_space<vmem>>, %arg5: memref<8x128xf32, #tpu.memory_space<vmem>>, %arg6: memref<8x128xf32, #tpu.memory_space<vmem>>) attributes {dimension_semantics = [#tpu.dimension_semantics<parallel>, #tpu.dimension_semantics<arbitrary>], iteration_bounds = array<i64: 1, 1>, scalar_prefetch = 0 : i64, scratch_operands = 1 : i64, tpu.core_type = #tpu.core_type<tc>, window_params = [{transform_indices = @transform_0, window_bounds = array<i64: 8, 256>}, {pipeline_mode = #tpu.pipeline_mode<synchronous>, transform_indices = @transform_1, window_bounds = array<i64: 256, 128>}, {pipeline_mode = #tpu.pipeline_mode<synchronous>, transform_indices = @transform_2, window_bounds = array<i64: 1, 128>}, {transform_indices = @transform_3, window_bounds = array<i64: 8, 128>}]} {
    %c0_i32 = arith.constant 0 : i32
    %0 = arith.cmpi eq, %arg1, %c0_i32 : i32
    %1 = arith.extui %0 : i1 to i32
    %c0_i32_0 = arith.constant 0 : i32
    %2 = arith.cmpi ne, %1, %c0_i32_0 : i32
    scf.if %2 {
      %cst_10 = arith.constant 0.000000e+00 : f32
      %12 = vector.broadcast %cst_10 : f32 to vector<8x128xf32>
      %c0_11 = arith.constant 0 : index
      %c0_12 = arith.constant 0 : index
      %13 = vector.load %arg6[%c0_11, %c0_12] : memref<8x128xf32, #tpu.memory_space<vmem>>, vector<8x128xf32>
      tpu.vector_store %arg6[%c0_11, %c0_12], %12 {strides = array<i32>} : memref<8x128xf32, #tpu.memory_space<vmem>>, vector<8x128xf32>,
    } else {
    }
    %c0 = arith.constant 0 : index
    %c0_1 = arith.constant 0 : index
    %3 = vector.load %arg6[%c0, %c0_1] : memref<8x128xf32, #tpu.memory_space<vmem>>, vector<8x128xf32>
    %c0_2 = arith.constant 0 : index
    %c0_3 = arith.constant 0 : index
    %4 = vector.load %arg2[%c0_2, %c0_3] : memref<8x256xf32, #tpu.memory_space<vmem>>, vector<8x256xf32>
    %c0_4 = arith.constant 0 : index
    %c0_5 = arith.constant 0 : index
    %5 = vector.load %arg3[%c0_4, %c0_5] : memref<256x128xf32, #tpu.memory_space<vmem>>, vector<256x128xf32>
    %cst = arith.constant dense<0.000000e+00> : vector<8x128xf32>
    %6 = tpu.matmul %4, %5, %cst {dimension_numbers = #tpu.dot_dimension_numbers<[1], [0], [0], [1], [0, 0, 1, 1], [], []>} : vector<8x256xf32>, vector<256x128xf32>, vector<8x128xf32> -> vector<8x128xf32>
    %7 = arith.addf %3, %6 : vector<8x128xf32>
    %c0_6 = arith.constant 0 : index
    %c0_7 = arith.constant 0 : index
    %8 = vector.load %arg6[%c0_6, %c0_7] : memref<8x128xf32, #tpu.memory_space<vmem>>, vector<8x128xf32>
    tpu.vector_store %arg6[%c0_6, %c0_7], %7 {strides = array<i32>} : memref<8x128xf32, #tpu.memory_space<vmem>>, vector<8x128xf32>,
    %c0_i32_8 = arith.constant 0 : i32
    %9 = arith.cmpi eq, %arg1, %c0_i32_8 : i32
    %10 = arith.extui %9 : i1 to i32
    %c0_i32_9 = arith.constant 0 : i32
    %11 = arith.cmpi ne, %10, %c0_i32_9 : i32
    scf.if %11 {
      %c0_10 = arith.constant 0 : index
      %c0_11 = arith.constant 0 : index
      %12 = vector.load %arg6[%c0_10, %c0_11] : memref<8x128xf32, #tpu.memory_space<vmem>>, vector<8x128xf32>
      %c0_12 = arith.constant 0 : index
      %c0_13 = arith.constant 0 : index
      %13 = vector.load %arg4[%c0_12, %c0_13] : memref<1x128xf32, #tpu.memory_space<vmem>>, vector<1x128xf32>
      %14 = vector.broadcast %13 : vector<1x128xf32> to vector<8x128xf32>
      %15 = arith.addf %12, %14 : vector<8x128xf32>
      %c0_14 = arith.constant 0 : index
      %c0_15 = arith.constant 0 : index
      %16 = vector.load %arg5[%c0_14, %c0_15] : memref<8x128xf32, #tpu.memory_space<vmem>>, vector<8x128xf32>
      tpu.vector_store %arg5[%c0_14, %c0_15], %15 {strides = array<i32>} : memref<8x128xf32, #tpu.memory_space<vmem>>, vector<8x128xf32>,
    } else {
    }
    return
  }
  func.func @transform_0(%arg0: i32, %arg1: i32) -> (i32, i32) {
    %c0_i32 = arith.constant 0 : i32
    return %arg0, %arg1 : i32, i32
  }
  func.func @transform_1(%arg0: i32, %arg1: i32) -> (i32, i32) {
    %c0_i32 = arith.constant 0 : i32
    %c0_i32_0 = arith.constant 0 : i32
    %c0_i32_1 = arith.constant 0 : i32
    return %c0_i32, %c0_i32_0 : i32, i32
  }
  func.func @transform_2(%arg0: i32, %arg1: i32) -> (i32, i32) {
    %c0_i32 = arith.constant 0 : i32
    %c0_i32_0 = arith.constant 0 : i32
    %c0_i32_1 = arith.constant 0 : i32
    return %c0_i32, %c0_i32_0 : i32, i32
  }
  func.func @transform_3(%arg0: i32, %arg1: i32) -> (i32, i32) {
    %c0_i32 = arith.constant 0 : i32
    %c0_i32_0 = arith.constant 0 : i32
    return %arg0, %c0_i32 : i32, i32
  }
}

</mosaic_0001>

<bundles_post_ra>
// kernel: tpu_custom_call.1
= control target key start
LH: loop header
LB: loop body
LE: loop exit
PB: predicated region body
PF: predicated region fallthrough
CT: control target
= control target key end

     0   :  { %8 = vsyncpa [#allocation4], 0  ;;  %s326_s0 = inlined_call_operand.hbm [shape: f32[8,256], index: 0, kind: input, shape index: {}]   ;;  %s327_s1 = inlined_call_operand.hbm [shape: f32[256,128], index: 1, kind: input, shape index: {}]   ;;  %s328_s2 = inlined_call_operand.vmem [shape: f32[1,128], index: 2, kind: input, shape index: {}]   ;;  %s329_s3 = inlined_call_operand.hbm [shape: f32[8,128], index: 3, kind: output, shape index: {}]  }
   0x1   :  { %9 = vsyncpa [#allocation7], 0 }
   0x2   :  { %10 = vsyncpa [#allocation5], 0  ;;  %s289_s12 = smov [#allocation3]   ;;  %s290_s14 = smov [#allocation6]  }
   0x3   :  { %s17_s13 = sshll.u32 %s289_s12, 4  ;;  %s26_s15 = sshll.u32 %s290_s14, 4  ;;  %s18_s13 = int_to_ptr.vmem [resolvable:$true] %s17_s13  ;;  %s27_s15 = int_to_ptr.vmem [resolvable:$true] %s26_s15 }
   0x4   :  { %s231_s16 = scalar_lea.vmem %s18_s13, 256  ;;  %p236_p1 = scmp.lt.s32.totalorder %s18_s13, %s18_s13 }
   0x5   :  { %p232_p0 = scmp.ne.s32.totalorder %s18_s13, %s231_s16  ;;  %p237_p2 = scmp.lt.s32.totalorder %s231_s16, %s231_s16 }
   0x7   :  { %p238_p3 = por %p237_p2, %p236_p1 }
   0x9   :  { %p239_p4 = pnand %p238_p3, %p232_p0 }
   0xb   :  { %242 = shalt.err (!%p239_p4)
}
   0xc   :  { %20 = dma.hbm_to_vmem [thread:$0]  %s326_s0, 256, %s18_s13, [#allocation4]  }
   0xd   :  { %s251_s19 = scalar_lea.vmem %s27_s15, 4096  ;;  %p256_p6 = scmp.lt.s32.totalorder %s27_s15, %s27_s15 }
   0xe   :  { %p252_p5 = scmp.ne.s32.totalorder %s27_s15, %s251_s19  ;;  %p257_p7 = scmp.lt.s32.totalorder %s251_s19, %s251_s19 }
  0x10   :  { %p258_p8 = por %p257_p7, %p256_p6 }
  0x12   :  { %p259_p9 = pnand %p258_p8, %p252_p5 }
  0x14   :  { %262 = shalt.err (!%p259_p9)
}
  0x15   :  { %s291_s20 = smov 128   ;;  %s292_s21 = smov 8  }
  0x16   :  { %32 = dma.hbm_to_vmem [thread:$0]  %s327_s1, 4096, %s27_s15, [#allocation7], %s291_s20, %s291_s20, %s292_s21  }
  0x17   :  { %283 = dma.done.wait [#allocation4], 256  }
  0x18   :  { %284 = vsyncadd [#allocation4], 4294967040 }
  0x19   :  { %285 = dma.done.wait [#allocation7], 4096  }
  0x1a   :  { %286 = vsyncadd [#allocation7], 4294963200  ;;  %v80_v0 = vld [vmem:[#allocation6 + $0xf8] sm:$0xff]  ;;  %v79_v2 = vld [vmem:[#allocation6 + $0xf0] sm:$0xff]  ;;  %s293_s24 = smov [#allocation8]  }
  0x1b   :  { %v64_v1 = vld [vmem:[#allocation6 + $0x78] sm:$0xff]  ;;  %183 = vmatprep.subr.mxu0 %v80_v0  ;;  %v63_v3 = vld [vmem:[#allocation6 + $0x70] sm:$0xff]  ;;  %v78_v4 = vld [vmem:[#allocation6 + $0xe8] sm:$0xff]  ;;  %s172_s25 = sshll.u32 %s293_s24, 4  ;;  %s173_s25 = int_to_ptr.vmem [resolvable:$true] %s172_s25 }
  0x1c   :  { %184 = vmatpush3.msra.mxu0 %v64_v1  ;;  %v62_v5 = vld [vmem:[#allocation6 + $0x68] sm:$0xff]  ;;  %v77_v6 = vld [vmem:[#allocation6 + $0xe0] sm:$0xff]  ;;  %v76_v8 = vld [vmem:[#allocation6 + $0xd8] sm:$0xff]  ;;  %s263_s26 = scalar_lea.vmem %s173_s25, 128  ;;  %p268_p11 = scmp.lt.s32.totalorder %s173_s25, %s173_s25 }
  0x1d   :  { %185 = vmatprep.subr.mxu0 %v79_v2  ;;  %v61_v7 = vld [vmem:[#allocation6 + $0x60] sm:$0xff]  ;;  %v60_v9 = vld [vmem:[#allocation6 + $0x58] sm:$0xff]  ;;  %v75_v10 = vld [vmem:[#allocation6 + $0xd0] sm:$0xff]  ;;  %p264_p10 = scmp.ne.s32.totalorder %s173_s25, %s263_s26  ;;  %p269_p12 = scmp.lt.s32.totalorder %s263_s26, %s263_s26 }
  0x1e   :  { %186 = vmatpush3.msra.mxu0 %v63_v3  ;;  %v59_v11 = vld [vmem:[#allocation6 + $0x50] sm:$0xff]  ;;  %v74_v12 = vld [vmem:[#allocation6 + $0xc8] sm:$0xff]  ;;  %v48_v13 = vld [vmem:[#allocation3 + $0x8] sm:$0xff] }
  0x1f   :  { %187 = vmatprep.subr.mxu0 %v78_v4  ;;  %v58_v14 = vld [vmem:[#allocation6 + $0x48] sm:$0xff]  ;;  %145 = vmatprep.mubr.f32.mxu0 %v48_v13  ;;  %v73_v15 = vld [vmem:[#allocation6 + $0xc0] sm:$0xff]  ;;  %v72_v17 = vld [vmem:[#allocation6 + $0xb8] sm:$0xff]  ;;  %p270_p13 = por %p269_p12, %p268_p11 }
  0x20   :  { %188 = vmatpush3.msra.mxu0 %v62_v5  ;;  %v57_v16 = vld [vmem:[#allocation6 + $0x40] sm:$0xff]  ;;  %v56_v18 = vld [vmem:[#allocation6 + $0x38] sm:$0xff]  ;;  %v71_v19 = vld [vmem:[#allocation6 + $0xb0] sm:$0xff] }
  0x21   :  { %189 = vmatprep.subr.mxu0 %v77_v6  ;;  %v55_v20 = vld [vmem:[#allocation6 + $0x30] sm:$0xff]  ;;  %v70_v21 = vld [vmem:[#allocation6 + $0xa8] sm:$0xff]  ;;  %v69_v23 = vld [vmem:[#allocation6 + $0xa0] sm:$0xff]  ;;  %p271_p0 = pnand %p270_p13, %p264_p10 }
  0x22   :  { %190 = vmatpush3.msra.mxu0 %v61_v7  ;;  %v54_v22 = vld [vmem:[#allocation6 + $0x28] sm:$0xff]  ;;  %v53_v24 = vld [vmem:[#allocation6 + $0x20] sm:$0xff]  ;;  %v68_v25 = vld [vmem:[#allocation6 + $0x98] sm:$0xff] }
  0x23   :  { %191 = vmatprep.subr.mxu0 %v76_v8  ;;  %v52_v26 = vld [vmem:[#allocation6 + $0x18] sm:$0xff]  ;;  %v67_v27 = vld [vmem:[#allocation6 + $0x90] sm:$0xff]  ;;  %v66_v29 = vld [vmem:[#allocation6 + $0x88] sm:$0xff] }
  0x24   :  { %192 = vmatpush3.msra.mxu0 %v60_v9  ;;  %v51_v28 = vld [vmem:[#allocation6 + $0x10] sm:$0xff]  ;;  %v50_v30 = vld [vmem:[#allocation6 + $0x8] sm:$0xff]  ;;  %v65_v31 = vld [vmem:[#allocation6 + $0x80] sm:$0xff] }
  0x25   :  { %193 = vmatprep.subr.mxu0 %v75_v10  ;;  %v49_v32 = vld [vmem:[#allocation6] sm:$0xff]  ;;  %v47_v33 = vld [vmem:[#allocation3] sm:$0xff] }
  0x26   :  { %194 = vmatpush3.msra.mxu0 %v59_v11  ;;  %v182_v36 = vld [vmem:[%s328_s2] ss:$0 sm:$0xff] }
  0x27   :  { %195 = vmatprep.subr.mxu0 %v74_v12 }
  0x28   :  { %196 = vmatpush3.msra.mxu0 %v58_v14 }
  0x29   :  { %197 = vmatprep.subr.mxu0 %v73_v15 }
  0x2a   :  { %198 = vmatpush3.msra.mxu0 %v57_v16 }
  0x2b   :  { %199 = vmatprep.subr.mxu0 %v72_v17 }
  0x2c   :  { %200 = vmatpush3.msra.mxu0 %v56_v18 }
  0x2d   :  { %201 = vmatprep.subr.mxu0 %v71_v19 }
  0x2e   :  { %202 = vmatpush3.msra.mxu0 %v55_v20 }
  0x2f   :  { %203 = vmatprep.subr.mxu0 %v70_v21 }
  0x30   :  { %204 = vmatpush3.msra.mxu0 %v54_v22 }
  0x31   :  { %205 = vmatprep.subr.mxu0 %v69_v23 }
  0x32   :  { %206 = vmatpush3.msra.mxu0 %v53_v24 }
  0x33   :  { %207 = vmatprep.subr.mxu0 %v68_v25 }
  0x34   :  { %208 = vmatpush3.msra.mxu0 %v52_v26 }
  0x35   :  { %209 = vmatprep.subr.mxu0 %v67_v27 }
  0x36   :  { %210 = vmatpush3.msra.mxu0 %v51_v28 }
  0x37   :  { %211 = vmatprep.subr.mxu0 %v66_v29 }
  0x38   :  { %212 = vmatpush3.msra.mxu0 %v50_v30 }
  0x39   :  { %213 = vmatprep.subr.mxu0 %v65_v31 }
  0x3a   :  { %214 = vmatpush3.msra.mxu0 %v49_v32 }
  0x3b   :  { %146 = vmatmul.mubr.f32.vlgmr.msra.gmra.mxu0 %v47_v33 }
  0xfb   :  { %v215_v34 = vpop.f32.mrf.mxu0 }
  0xfd   :  { %v216_v35 = vpop.f32.mrf.mxu0 }
  0xfe   :  { %v217_v37 = vadd.f32 %v216_v35, %v215_v34 }
 0x100   :  { %v164_v38 = vadd.f32 %v217_v37, %v182_v36 }
 0x102   :  { %165 = vst [vmem:[#allocation8] sm:$0xff] %v164_v38 }
 0x103   :  { %274 = shalt.err (!%p271_p0)
}
 0x104   :  { %175 = dma.vmem_to_hbm [thread:$0]  %s173_s25, 128, %s329_s3, [#allocation5]  }
 0x105   :  { %287 = dma.done.wait [#allocation5], 128  }
 0x106   :  { %288 = vsyncadd [#allocation5], 4294967168 }
 0x107   :  { %179 = vsyncpa [#allocation4], 1 }
 0x108   :  { %180 = vsyncpa [#allocation7], 1 }
 0x109   :  { %181 = vsyncpa [#allocation5], 1 }

</bundles_post_ra>
